<compile_context>
chip_gen: v6e
topology: v6e:2x2x1
jax: 0.10.0
libtpu: 0.0.40
codegen_flags: <defaults>
</compile_context>

<pallas_src>
import functools
import math

import numpy as np
import jax
import jax.numpy as jnp
from jax import lax
from jax.experimental import pallas as pl
from jax.experimental.pallas import tpu as pltpu

KH = KW = 3  # Conv2d kernel size


# ------------------------------ Pallas kernel -------------------------------
def _conv3x3_bias_prelu_kernel(x_ref, w_ref, b_ref, a_ref, o_ref, *, img_w):
    # x_ref: (KW, Cin, (tH+2)*W)  bf16 halo'd row-block slab; axis 0 = kj shift
    # w_ref: (KH, tCout, KW*Cin)  bf16 weights, kj folded into the K axis
    # b_ref: (tCout, 1)           f32 conv bias
    # a_ref: (1,) in SMEM         f32 PReLU alpha (nn.PReLU() default: scalar)
    # o_ref: (tCout, tM)          conv output tile, tM = tH*W (lane-dense)
    t_cout, t_m = o_ref.shape
    k3 = w_ref.shape[2]  # KW * Cin

    # Bias-initialized f32 accumulator (saves one full-tile VALU add).
    acc = jnp.broadcast_to(b_ref[...], (t_cout, t_m))
    for ki in range(KH):
        # Output pixel p needs slab columns ki*W + p for every kj plane; the
        # three kj planes are sublane-contiguous so the fold below is free
        # (Cin is padded to a multiple of 8 in the wrapper).
        a_tap = x_ref[:, :, ki * img_w: ki * img_w + t_m]      # (KW, Cin, tM)
        a_tap = a_tap.reshape(k3, t_m)                          # (KW*Cin, tM)
        acc = acc + jnp.dot(w_ref[ki], a_tap,
                            preferred_element_type=jnp.float32)

    alpha = a_ref[0]
    y = jnp.where(acc > 0, acc, alpha * acc)                    # PReLU (scalar)
    o_ref[...] = y.astype(o_ref.dtype)


# ------------------------------ helpers --------------------------------------
def _round_up(v, m):
    return (v + m - 1) // m * m


def _pick_cout_tile(cout):
    # <=128 per the review (keep the f32 accumulator a few hundred KiB).
    for cand in (128, 64, 32, 16, 8):
        if cand <= cout and cout % cand == 0:
            return cand
    return cout  # block == full dim is always legal


def _pick_row_tile(h, w, target_m=1024):
    # Largest tH dividing H with tH*W a multiple of 128 and tH*W <= target_m,
    # while keeping >=2 row blocks so the (parallel) M axis can feed both v7x
    # TensorCores even at N=1 / single Cout tile.
    best = None
    for th in range(1, h):
        if h % th:
            continue
        tm = th * w
        if tm % 128 == 0 and tm <= target_m:
            best = th
    if best is None:
        # TODO(synk): for shapes where no divisor works, fall back to a single
        # full-height block (always legal; only hurts VMEM at very large H*W).
        return h
    return best


# ------------------------------ wrapper (JAX) --------------------------------
@functools.partial(jax.jit, static_argnames=("upscale_factor", "compute_dtype"))
def upsample_block_forward(x, weight, bias, alpha, *, upscale_factor,
                           compute_dtype=jnp.bfloat16):
    """x: (N, C, H, W); weight: (C*r*r, C, 3, 3); bias: (C*r*r,); alpha: scalar."""
    n, c, h, w = x.shape
    r = upscale_factor
    cout = c * r * r
    assert weight.shape == (cout, c, KH, KW)

    # PReLU-before-PixelShuffle is only valid for the single shared alpha.
    # TODO(synk): per-channel PReLU (num_parameters=C) would need alpha[c]
    # indexed through the PixelShuffle channel mapping c = co // (r*r).
    alpha = jnp.asarray(alpha, jnp.float32).reshape(-1)
    assert alpha.shape == (1,), "only the nn.PReLU() default (scalar alpha) is supported"

    out_dtype = x.dtype
    m = h * w

    # Zero-pad Cin to a multiple of 8 so the in-kernel kj fold is tile-aligned.
    c_pad = max(_round_up(c, 8), 8)
    if c_pad != c:
        x = jnp.pad(x, ((0, 0), (0, c_pad - c), (0, 0), (0, 0)))
        weight = jnp.pad(weight, ((0, 0), (0, c_pad - c), (0, 0), (0, 0)))

    # Conv2d(padding=1, zeros) spatial pad + three kj-shifted planes (bf16).
    xc = x.astype(compute_dtype)
    xp = jnp.pad(xc, ((0, 0), (0, 0), (1, 1), (1, 1)))               # (N,Cp,H+2,W+2)
    planes = jnp.stack([xp[:, :, :, kj:kj + w] for kj in range(KW)],
                       axis=1)                                        # (N,3,Cp,H+2,W)

    # Halo'd row-block slabs -> static in-kernel tap slices + M grid axis.
    t_h = _pick_row_tile(h, w)
    n_mb = h // t_h
    t_m = t_h * w
    slab_len = (t_h + 2) * w
    slabs = jnp.stack([planes[:, :, :, mb * t_h: mb * t_h + t_h + 2, :]
                       for mb in range(n_mb)], axis=1)                # (N,nmb,3,Cp,tH+2,W)
    slabs = slabs.reshape(n, n_mb, KW, c_pad, slab_len)

    # Weights (KH, Cout, KW*Cin) so the kj axis lines up with the folded K axis.
    wk = jnp.transpose(weight, (2, 0, 3, 1)).reshape(KH, cout, KW * c_pad)
    wk = wk.astype(compute_dtype)
    b2 = bias.reshape(cout, 1).astype(jnp.float32)

    t_cout = _pick_cout_tile(cout)
    n_co = cout // t_cout
    grid = (n, n_mb, n_co)

    comp_b = np.dtype(compute_dtype).itemsize
    out_b = np.dtype(out_dtype).itemsize

    # Explicit VMEM budget (double-buffered tiles + f32 accumulator + headroom).
    slab_tile = KW * c_pad * slab_len * comp_b
    w_tile = KH * t_cout * KW * c_pad * comp_b
    out_tile = t_cout * t_m * out_b
    acc_bytes = t_cout * t_m * 4
    need = 2 * (slab_tile + w_tile + t_cout * 4 + out_tile) + acc_bytes + (1 << 20)
    vmem_limit = int(min(max(2 * need, 32 * 1024 * 1024), 48 * 1024 * 1024))

    flops = 2 * n * cout * c_pad * KH * KW * m
    bytes_accessed = int(slabs.size * comp_b + wk.size * comp_b
                         + b2.size * 4 + n * cout * m * out_b)

    out_flat = pl.pallas_call(
        functools.partial(_conv3x3_bias_prelu_kernel, img_w=w),
        out_shape=jax.ShapeDtypeStruct((n, cout, m), out_dtype),
        grid=grid,
        in_specs=[
            # Slab for (ni, mb): constant over the co axis -> stays resident in
            # VMEM across Cout tiles.
            pl.BlockSpec((None, None, KW, c_pad, slab_len),
                         lambda ni, mb, co: (ni, mb, 0, 0, 0)),
            pl.BlockSpec((KH, t_cout, KW * c_pad),
                         lambda ni, mb, co: (0, co, 0)),
            pl.BlockSpec((t_cout, 1), lambda ni, mb, co: (co, 0)),
            pl.BlockSpec(memory_space=pltpu.MemorySpace.SMEM),
        ],
        out_specs=pl.BlockSpec((None, t_cout, t_m),
                               lambda ni, mb, co: (ni, co, mb)),
        compiler_params=pltpu.CompilerParams(
            dimension_semantics=("parallel", "parallel", "arbitrary"),
            vmem_limit_bytes=vmem_limit),
        cost_estimate=pl.CostEstimate(
            flops=flops, transcendentals=0, bytes_accessed=bytes_accessed),
    )(slabs, wk, b2, alpha)

    # PixelShuffle(r): (N, C*r*r, H, W) -> (N, C, H*r, W*r).  PReLU (single
    # shared alpha) already applied in-kernel and commutes with this permutation.
    y = out_flat.reshape(n, c, r, r, h, w)
    y = y.transpose(0, 1, 4, 2, 5, 3).reshape(n, c, h * r, w * r)
    return y


# -------------------------------- reference ----------------------------------
def _reference(x, weight, bias, alpha, r):
    y = lax.conv_general_dilated(
        x, weight, window_strides=(1, 1), padding=((1, 1), (1, 1)),
        dimension_numbers=("NCHW", "OIHW", "NCHW"),
        precision=lax.Precision.HIGHEST)
    y = y + bias.reshape(1, -1, 1, 1)
    n, co, h, w = y.shape
    c = co // (r * r)
    y = y.reshape(n, c, r, r, h, w).transpose(0, 1, 4, 2, 5, 3)
    y = y.reshape(n, c, h * r, w * r)
    return jnp.maximum(y, 0.0) + jnp.asarray(alpha, y.dtype) * jnp.minimum(y, 0.0)


if __name__ == "__main__":
    key = jax.random.PRNGKey(0)
    kx, kw_, kb = jax.random.split(key, 3)

    N, C, H, W = 2, 4, 16, 16          # small shapes consistent with the module
    r = 2                              # upscale_factor
    Cout = C * r * r

    x = jax.random.normal(kx, (N, C, H, W), dtype=jnp.float32)
    fan_in = C * KH * KW
    bound = 1.0 / math.sqrt(fan_in)    # PyTorch Conv2d-like uniform init scale
    weight = jax.random.uniform(kw_, (Cout, C, KH, KW),
                                minval=-bound, maxval=bound, dtype=jnp.float32)
    bias = jax.random.uniform(kb, (Cout,),
                              minval=-bound, maxval=bound, dtype=jnp.float32)
    alpha = jnp.float32(0.25)          # nn.PReLU() default init

    y = upsample_block_forward(x, weight, bias, alpha, upscale_factor=r)
    jax.block_until_ready(y)

    y_ref = _reference(x, weight, bias, alpha, r)
    # bf16 matmuls (f32 accumulation) vs the f32 HIGHEST reference -> ~1e-2 tol.
    np.testing.assert_allclose(np.asarray(y, dtype=np.float32),
                               np.asarray(y_ref, dtype=np.float32),
                               rtol=2e-2, atol=2e-2)
    assert y.shape == (N, C, H * r, W * r)
    print("KERNEL_OK")
</pallas_src>

<mosaic_0001>
module attributes {stable_mosaic.version = 11 : i64} {
  func.func @_conv3x3_bias_prelu_kernel(%arg0: i32, %arg1: i32, %arg2: i32, %arg3: memref<1x1x3x8x160xbf16, #tpu.memory_space<vmem>>, %arg4: memref<3x16x24xbf16, #tpu.memory_space<vmem>>, %arg5: memref<16x1xf32, #tpu.memory_space<vmem>>, %arg6: memref<1xf32, #tpu.memory_space<smem>>, %arg7: memref<1x16x128xf32, #tpu.memory_space<vmem>>) attributes {dimension_semantics = [#tpu.dimension_semantics<parallel>, #tpu.dimension_semantics<parallel>, #tpu.dimension_semantics<arbitrary>], iteration_bounds = array<i64: 2, 2, 1>, scalar_prefetch = 0 : i64, scratch_operands = 0 : i64, tpu.core_type = #tpu.core_type<tc>, window_params = [{transform_indices = @transform_0, window_bounds = array<i64: 1, 1, 3, 8, 160>}, {transform_indices = @transform_1, window_bounds = array<i64: 3, 16, 24>}, {transform_indices = @transform_2, window_bounds = array<i64: 16, 1>}, {transform_indices = @transform_3, window_bounds = array<i64: 1>}, {transform_indices = @transform_4, window_bounds = array<i64: 1, 16, 128>}]} {
    %c0 = arith.constant 0 : index
    %c0_0 = arith.constant 0 : index
    %0 = vector.load %arg5[%c0, %c0_0] : memref<16x1xf32, #tpu.memory_space<vmem>>, vector<16x1xf32>
    %1 = vector.shape_cast %0 : vector<16x1xf32> to vector<16x1xf32>
    %2 = vector.broadcast %1 : vector<16x1xf32> to vector<16x128xf32>
    %c0_1 = arith.constant 0 : index
    %c0_2 = arith.constant 0 : index
    %c0_3 = arith.constant 0 : index
    %c0_4 = arith.constant 0 : index
    %c0_5 = arith.constant 0 : index
    %3 = vector.load %arg3[%c0_1, %c0_2, %c0_3, %c0_4, %c0_5] : memref<1x1x3x8x160xbf16, #tpu.memory_space<vmem>>, vector<1x1x3x8x128xbf16>
    %4 = vector.shape_cast %3 : vector<1x1x3x8x128xbf16> to vector<3x8x128xbf16>
    %5 = vector.shape_cast %4 : vector<3x8x128xbf16> to vector<24x128xbf16>
    %c0_6 = arith.constant 0 : index
    %c0_7 = arith.constant 0 : index
    %c0_8 = arith.constant 0 : index
    %6 = vector.load %arg4[%c0_6, %c0_7, %c0_8] : memref<3x16x24xbf16, #tpu.memory_space<vmem>>, vector<1x16x24xbf16>
    %7 = vector.shape_cast %6 : vector<1x16x24xbf16> to vector<16x24xbf16>
    %cst = arith.constant dense<0.000000e+00> : vector<16x128xf32>
    %8 = tpu.matmul %7, %5, %cst {dimension_numbers = #tpu.dot_dimension_numbers<[1], [0], [0], [1], [0, 0, 1, 1], [], []>} : vector<16x24xbf16>, vector<24x128xbf16>, vector<16x128xf32> -> vector<16x128xf32>
    %9 = arith.addf %2, %8 : vector<16x128xf32>
    %c0_9 = arith.constant 0 : index
    %c0_10 = arith.constant 0 : index
    %c0_11 = arith.constant 0 : index
    %c0_12 = arith.constant 0 : index
    %c16 = arith.constant 16 : index
    %10 = vector.load %arg3[%c0_9, %c0_10, %c0_11, %c0_12, %c16] : memref<1x1x3x8x160xbf16, #tpu.memory_space<vmem>>, vector<1x1x3x8x128xbf16>
    %11 = vector.shape_cast %10 : vector<1x1x3x8x128xbf16> to vector<3x8x128xbf16>
    %12 = vector.shape_cast %11 : vector<3x8x128xbf16> to vector<24x128xbf16>
    %c1 = arith.constant 1 : index
    %c0_13 = arith.constant 0 : index
    %c0_14 = arith.constant 0 : index
    %13 = vector.load %arg4[%c1, %c0_13, %c0_14] : memref<3x16x24xbf16, #tpu.memory_space<vmem>>, vector<1x16x24xbf16>
    %14 = vector.shape_cast %13 : vector<1x16x24xbf16> to vector<16x24xbf16>
    %cst_15 = arith.constant dense<0.000000e+00> : vector<16x128xf32>
    %15 = tpu.matmul %14, %12, %cst_15 {dimension_numbers = #tpu.dot_dimension_numbers<[1], [0], [0], [1], [0, 0, 1, 1], [], []>} : vector<16x24xbf16>, vector<24x128xbf16>, vector<16x128xf32> -> vector<16x128xf32>
    %16 = arith.addf %9, %15 : vector<16x128xf32>
    %c0_16 = arith.constant 0 : index
    %c0_17 = arith.constant 0 : index
    %c0_18 = arith.constant 0 : index
    %c0_19 = arith.constant 0 : index
    %c32 = arith.constant 32 : index
    %17 = vector.load %arg3[%c0_16, %c0_17, %c0_18, %c0_19, %c32] : memref<1x1x3x8x160xbf16, #tpu.memory_space<vmem>>, vector<1x1x3x8x128xbf16>
    %18 = vector.shape_cast %17 : vector<1x1x3x8x128xbf16> to vector<3x8x128xbf16>
    %19 = vector.shape_cast %18 : vector<3x8x128xbf16> to vector<24x128xbf16>
    %c2 = arith.constant 2 : index
    %c0_20 = arith.constant 0 : index
    %c0_21 = arith.constant 0 : index
    %20 = vector.load %arg4[%c2, %c0_20, %c0_21] : memref<3x16x24xbf16, #tpu.memory_space<vmem>>, vector<1x16x24xbf16>
    %21 = vector.shape_cast %20 : vector<1x16x24xbf16> to vector<16x24xbf16>
    %cst_22 = arith.constant dense<0.000000e+00> : vector<16x128xf32>
    %22 = tpu.matmul %21, %19, %cst_22 {dimension_numbers = #tpu.dot_dimension_numbers<[1], [0], [0], [1], [0, 0, 1, 1], [], []>} : vector<16x24xbf16>, vector<24x128xbf16>, vector<16x128xf32> -> vector<16x128xf32>
    %23 = arith.addf %16, %22 : vector<16x128xf32>
    %c0_23 = arith.constant 0 : index
    %24 = memref.load %arg6[%c0_23] : memref<1xf32, #tpu.memory_space<smem>>
    %cst_24 = arith.constant 0.000000e+00 : f32
    %25 = vector.broadcast %cst_24 : f32 to vector<16x128xf32>
    %26 = arith.cmpf ogt, %23, %25 : vector<16x128xf32>
    %27 = vector.broadcast %24 : f32 to vector<16x128xf32>
    %28 = arith.mulf %27, %23 : vector<16x128xf32>
    %29 = arith.select %26, %23, %28 : vector<16x128xi1>, vector<16x128xf32>
    %c0_25 = arith.constant 0 : index
    %c0_26 = arith.constant 0 : index
    %c0_27 = arith.constant 0 : index
    %30 = vector.load %arg7[%c0_25, %c0_26, %c0_27] : memref<1x16x128xf32, #tpu.memory_space<vmem>>, vector<1x16x128xf32>
    %31 = vector.shape_cast %30 : vector<1x16x128xf32> to vector<16x128xf32>
    %32 = vector.shape_cast %29 : vector<16x128xf32> to vector<1x16x128xf32>
    tpu.vector_store %arg7[%c0_25, %c0_26, %c0_27], %32 {strides = array<i32>} : memref<1x16x128xf32, #tpu.memory_space<vmem>>, vector<1x16x128xf32>,
    return
  }
  func.func @transform_0(%arg0: i32, %arg1: i32, %arg2: i32) -> (i32, i32, i32, i32, i32) {
    %c0_i32 = arith.constant 0 : i32
    %c0_i32_0 = arith.constant 0 : i32
    %c0_i32_1 = arith.constant 0 : i32
    %c0_i32_2 = arith.constant 0 : i32
    return %arg0, %arg1, %c0_i32, %c0_i32_0, %c0_i32_1 : i32, i32, i32, i32, i32
  }
  func.func @transform_1(%arg0: i32, %arg1: i32, %arg2: i32) -> (i32, i32, i32) {
    %c0_i32 = arith.constant 0 : i32
    %c0_i32_0 = arith.constant 0 : i32
    %c0_i32_1 = arith.constant 0 : i32
    return %c0_i32, %arg2, %c0_i32_0 : i32, i32, i32
  }
  func.func @transform_2(%arg0: i32, %arg1: i32, %arg2: i32) -> (i32, i32) {
    %c0_i32 = arith.constant 0 : i32
    %c0_i32_0 = arith.constant 0 : i32
    return %arg2, %c0_i32 : i32, i32
  }
  func.func @transform_3(%arg0: i32, %arg1: i32, %arg2: i32) -> i32 {
    %c0_i32 = arith.constant 0 : i32
    %c0_i32_0 = arith.constant 0 : i32
    return %c0_i32 : i32
  }
  func.func @transform_4(%arg0: i32, %arg1: i32, %arg2: i32) -> (i32, i32, i32) {
    %c0_i32 = arith.constant 0 : i32
    return %arg0, %arg2, %arg1 : i32, i32, i32
  }
}

</mosaic_0001>

<bundles_post_ra>
// kernel: upsample_block_forward.1
= control target key start
LH: loop header
LB: loop body
LE: loop exit
PB: predicated region body
PF: predicated region fallthrough
CT: control target
= control target key end

     0   :  { %s1029_s0 = inlined_call_operand.vmem [shape: bf16[2,2,3,8,160], index: 0, kind: input, shape index: {}]   ;;  %s1030_s1 = inlined_call_operand.vmem [shape: bf16[3,16,24], index: 1, kind: input, shape index: {}]   ;;  %s1031_s2 = inlined_call_operand.vmem [shape: f32[16,1], index: 2, kind: input, shape index: {}]   ;;  %s1032_s3 = inlined_call_operand.<no memory space> [shape: f32[1], index: 3, kind: input, shape index: {}]   ;;  %s1033_s4 = inlined_call_operand.vmem [shape: f32[2,16,256], index: 4, kind: output, shape index: {}]  }
   0x1   :  { %9 = sst [smem:[#allocation2]] %s1032_s3 }
   0x2   :  { %s908_s17 = smov 0   ;;  %s910_s18 = smov 0  }
   0x3   :  { %s912_s19 = smov 0   ;;  %s914_s20 = smov 0  }
   0x4   :  { %s916_s21 = smov 0   ;;  %s918_s22 = smov 0  }
   0x5   :  { %s920_s23 = smov 0  }
   0x6 LB: > { %s30_s3 = sadd.s32 1, %s865_s21  ;;  %s34_s24 = sadd.s32 1, %s869_s22  ;;  %s873_s23 = sphi %s920_s23, %s15_s23   ;;  %s869_s22 = sphi %s918_s22, %s1040_s22   ;;  %s865_s21 = sphi %s916_s21, %s1039_s21   ;;  %s861_s20 = sphi %s914_s20, %s1038_s20   ;;  %s857_s19 = sphi %s912_s19, %s1037_s19   ;;  %s853_s18 = sphi %s910_s18, %s1036_s18   ;;  %s849_s17 = sphi %s908_s17, %s1035_s17  }
   0x7   : > { %p32_p0 = scmp.ge.s32.totalorder %s30_s3, 2  ;;  %s681_s25 = sadd.s32 4294967295, %s873_s23  }
   0x8   : > { %p156_p1 = scmp.ne.s32.totalorder %s853_s18, %s849_s17  ;;  %p157_p2 = scmp.eq.s32.totalorder %s681_s25, 3 }
   0x9   : > { %s1042_s3 = smov (%p32_p0, %s30_s3), 0  ;;  %s1044_s24 = smov (!%p32_p0, %s34_s24), %s869_s22 }
   0xa   : > { %s142_s26 = ssub.s32 %s865_s21, %s1042_s3  ;;  %p36_p3 = scmp.ge.s32.totalorder %s1044_s24, 2 }
   0xb   : > { %p687_p4 = scmp.ge.s32.totalorder %s873_s23, 1  ;;  %p954_p5 = por %p157_p2, %p156_p1 }
   0xc   : > { %p214_p6 = scmp.lt.s32.totalorder %s873_s23, 5  ;;  %s1046_s24 = smov (%p36_p3, %s1044_s24), 0 }
   0xd   : > { %s139_s28 = ssub.s32 %s869_s22, %s1046_s24  ;;  %s146_s30 = sadd.s32 1, %s853_s18 }
   0xe   : > { %p215_p7 = pnand %p687_p4, %p214_p6  ;;  %s143_s29 = sor.u32 %s142_s26, %s139_s28 }
   0xf   : > { %p144_p8 = scmp.eq.s32.totalorder %s143_s29, 0  ;;  %p253_p9 = scmp.lt.s32.totalorder (!%p215_p7), %s861_s20, 1 }
  0x10   : > { %218 = sbr.rel (%p215_p7) target bundleno = 374 (0x176), region = 36  ;;  %p255_p10 = scmp.lt.s32.totalorder (!%p215_p7), %s857_s19, 1 }
  0x11   : > { %s965_s5 = scalar_select %p144_p8, %s853_s18, %s146_s30  }
  0x12   : > { %s877_s15 = smov (!%p215_p7), 96   ;;  %s878_s16 = smov (!%p215_p7), 112  }
  0x13   : > { %s250_s12 = sand.u32 (!%p215_p7), 1, %s849_s17  }
  0x14   : > { %s688_s13 = sshll.u32 (!%p215_p7), %s250_s12, 4 }
  0x15   : > { %v875_v0 = vmov 0.0   ;;  %vm876_vm0 = vmmov 0   ;;  %s254_s6 = scalar_select %p253_p9, %s861_s20, 1  ;;  %vm311_vm1 = vcmask 1043456   ;;  %v816_v9 = vld [vmem:[%s1030_s1] sm:$0xff]   ;;  %v879_v10 = vmov 0  }
  0x16   : > { %720 = vmatprep.subr.bf16.mxu0 %v875_v0  ;;  %724 = vmatprep.mubr.msk.bf16.mxu0 %vm876_vm0, %v875_v0  ;;  %s256_s7 = scalar_select %p255_p10, %s857_s19, 1  ;;  %vm307_vm2 = vcmask 195584   ;;  %v277_v11 = vld [vmem:[%s1031_s2 + $0x8] sm:$0xff]  ;;  %v276_v12 = vld [vmem:[%s1031_s2] sm:$0xff]  ;;  %vm459_vm3 = vcmask 785408   ;;  %vm390_vm4 = vcmask 916480  }
  0x17   : > { %728 = vmatprep.subr.bf16.mxu1 %v875_v0  ;;  %732 = vmatprep.mubr.msk.bf16.mxu1 %vm876_vm0, %v875_v0  ;;  %s745_s8 = smul.u32 12, %s254_s6  ;;  %v817_v24 = vld [vmem:[%s1030_s1 + $0x8] sm:$0xff]   ;;  %v818_v28 = vld [vmem:[%s1030_s1 + $0x10] sm:$0xff]   ;;  %s707_s17 = sshll.u32 (%p954_p5), %s861_s20, 2 }
  0x18   : > { %s744_s9 = smul.u32 6, %s256_s7  ;;  %808 = vset.pattern.permute.xlu1 %v879_v10  ;;  %807 = vset.pattern.permute.xlu0 %v879_v10 }
  0x1a   : > { %s259_s10 = sadd.s32 %s745_s8, %s744_s9 }
  0x1b   : > { %s689_s11 = sshll.u32 %s259_s10, 2 }
  0x1c   : > { %s261_s14 = scalar_lea.vmem %s1029_s0, %s689_s11  ;;  %s512_s11 = sld [smem:[#allocation2]] }
  0x1d   : > { %v360_v1 = vld [vmem:[%s261_s14 + $0x10] sm:$0xff]  ;;  %v815_v6 = vld [vmem:[%s261_s14] ss:$8 sps:$4 sm:$0xff]   ;;  %v811_v7 = vld [vmem:[%s261_s14 + $0x4] ss:$8 sps:$4 sm:$0xff]  }
  0x1e   : > { %v699_v2 = vcombine.low %v360_v1, %v360_v1  ;;  %v814_v3 = vld [vmem:[%s261_s14 + $0x10] ss:$0 sps:$4 sm:$0xff]   ;;  %v700_v4 = vcombine.high %v360_v1, %v360_v1  ;;  %v813_v8 = vld [vmem:[%s261_s14] ss:$8 sps:$4 sm:$0xff]   ;;  %s252_s14 = scalar_lea.vmem [#allocation3], %s688_s13 }
  0x1f   : > { %v313_v5 = vsel %vm311_vm1, %v814_v3, 0 }
  0x20   : > { %455 = vrot.lane.b32.xlu1 %v699_v2, %s877_s15  ;;  %386 = vrot.lane.b32.xlu0 %v699_v2, %s878_s16 }
  0x21   : > { %721 = vmatpush3.bf16.msra.mxu0 %v313_v5 }
  0x22   : > { %722 = vmatprep.subr.bf16.mxu0 %v875_v0  ;;  %v515_v41 = vstv %s512_s11 }
  0x24   : > { %457 = vrot.lane.b32.xlu1 %v700_v4, %s877_s15  ;;  %388 = vrot.lane.b32.xlu0 %v700_v4, %s878_s16 }
  0x25   : > { %723 = vmatpush3.bf16.msra.mxu0 %v815_v6 }
  0x26   : > { %736 = vmatprep.subr.bf16.mxu0 %v875_v0 }
  0x28   : > { %384 = vrot.lane.b32.xlu1 %v811_v7, %s878_s16  ;;  %382 = vrot.lane.b32.xlu0 %v813_v8, %s878_s16 }
  0x29   : > { %725 = vmatmul.mubr.msk.bf16.vlgmr.msra.gmra.mxu0 %vm307_vm2, %v816_v9 }
  0x2a   : > { %740 = vmatprep.mubr.msk.bf16.mxu0 %vm876_vm0, %v875_v0 }
  0x2c   : > { %453 = vrot.lane.b32.xlu1 %v811_v7, %s877_s15  ;;  %451 = vrot.lane.b32.xlu0 %v813_v8, %s877_s15  ;;  %s533_s15 = sadd.s32 (%p954_p5), %s857_s19, %s707_s17 }
  0x2d   : > { %s708_s16 = sshll.u32 (%p954_p5), %s533_s15, 3 }
  0x2e   : > { %s535_s28 = scalar_lea.vmem (%p954_p5), %s1033_s4, %s708_s16 }
  0x30   : > { %285 = vperm.xlu1 %808, %v277_v11   ;;  %280 = vperm.xlu0 %807, %v276_v12  }
  0x92   : > { %v456_v13 = vpop.permute.xlu1 %455  ;;  %v387_v14 = vpop.permute.xlu0 %386 }
  0x96   : > { %v458_v15 = vpop.permute.xlu1 %457  ;;  %v389_v16 = vpop.permute.xlu0 %388 }
  0x97   : > { %v461_v17 = vsel %vm459_vm3, %v456_v13, %v458_v15  ;;  %v392_v18 = vsel %vm390_vm4, %v387_v14, %v389_v16 }
  0x98   : > { %v467_v19 = vsel %vm311_vm1, %v461_v17, 0  ;;  %v398_v20 = vsel %vm311_vm1, %v392_v18, 0 }
  0x99   : > { %729 = vmatpush3.bf16.msra.mxu1 %v398_v20  ;;  %737 = vmatpush3.bf16.msra.mxu0 %v467_v19 }
  0x9a   : > { %v385_v21 = vpop.permute.xlu1 %384  ;;  %v383_v22 = vpop.permute.xlu0 %382  ;;  %730 = vmatprep.subr.bf16.mxu1 %v875_v0  ;;  %738 = vmatprep.subr.bf16.mxu0 %v875_v0 }
  0x9b   : > { %v391_v23 = vsel %vm390_vm4, %v383_v22, %v385_v21 }
  0x9d   : > { %731 = vmatpush3.bf16.msra.mxu1 %v391_v23 }
  0x9e   : > { %v454_v25 = vpop.permute.xlu1 %453  ;;  %v452_v26 = vpop.permute.xlu0 %451 }
  0x9f   : > { %v460_v27 = vsel %vm459_vm3, %v452_v26, %v454_v25 }
  0xa0   : > { %733 = vmatmul.mubr.msk.bf16.vlgmr.msra.gmra.mxu1 %vm307_vm2, %v817_v24  ;;  %739 = vmatpush3.bf16.msra.mxu0 %v460_v27 }
  0xa3   : > { %741 = vmatmul.mubr.msk.bf16.vlgmr.msra.gmra.mxu0 %vm307_vm2, %v818_v28 }
  0xab   : > { %v281_v33 = vpop.permute.xlu0 %280  ;;  %v286_v35 = vpop.permute.xlu1 %285 }
  0xe9   : > { %v349_v29 = vpop.f32.mrf.mxu0 }
  0xea   : > { %v356_v34 = vadd.f32 %v349_v29, %v281_v33 }
  0xeb   : > { %v726_v30 = vpop.f32.mrf.mxu0 }
  0xed   : > { %v352_v31 = vpop.f32.mrf.mxu0 }
  0xee   : > { %v357_v39 = vadd.f32 %v352_v31, %v286_v35 }
  0xef   : > { %v727_v32 = vpop.f32.mrf.mxu0 }
 0x160   : > { %v434_v36 = vpop.f32.mrf.mxu1 }
 0x161   : > { %v441_v37 = vadd.f32 %v434_v36, %v356_v34 }
 0x162   : > { %v734_v38 = vpop.f32.mrf.mxu1 }
 0x163   : > { %v503_v40 = vpop.f32.mrf.mxu0 }
 0x164   : > { %v510_v42 = vadd.f32 %v503_v40, %v441_v37  ;;  %v437_v43 = vpop.f32.mrf.mxu1 }
 0x165   : > { %v442_v44 = vadd.f32 %v437_v43, %v357_v39  ;;  %v742_v45 = vpop.f32.mrf.mxu0 }
 0x166   : > { %vm513_vm5 = vcmp.gt.f32.partialorder %v510_v42, 0.0  ;;  %v516_v46 = vmul.f32 %v515_v41, %v510_v42  ;;  %v735_v47 = vpop.f32.mrf.mxu1 }
 0x167   : > { %v506_v48 = vpop.f32.mrf.mxu0 }
 0x168   : > { %v518_v49 = vsel %vm513_vm5, %v510_v42, %v516_v46  ;;  %v511_v50 = vadd.f32 %v506_v48, %v442_v44 }
 0x169   : > { %520 = vst [vmem:[%s252_s14] sm:$0xff] %v518_v49  ;;  %v743_v51 = vpop.f32.mrf.mxu0  ;;  %528 = sbr.rel (!%p954_p5) target bundleno = 374 (0x176), region = 40 }
 0x16a   : > { %vm514_vm6 = vcmp.gt.f32.partialorder %v511_v50, 0.0  ;;  %v517_v52 = vmul.f32 %v515_v41, %v511_v50 }
 0x16c   : > { %v519_v53 = vsel %vm514_vm6, %v511_v50, %v517_v52 }
 0x16d   : > { %521 = vst [vmem:[%s252_s14 + $0x8] sm:$0xff] %v519_v53 }
 0x170   : > { %v566_v54 = vld [vmem:[%s252_s14] sm:$0xff] }
 0x171   : > { %567 = vst [vmem:[%s535_s28] sm:$0xff] %v566_v54 }
 0x174   : > { %v568_v55 = vld [vmem:[%s252_s14 + $0x8] sm:$0xff] }
 0x175   : > { %569 = vst [vmem:[%s535_s28 + $0x10] sm:$0xff] %v568_v55 }
 0x176 PF: > { %s15_s23 = sadd.s32 1, %s873_s23   ;;  %s1035_s17 = smov %s853_s18 }
 0x177   : > { %p12_p11 = scmp.ge.s32.totalorder %s15_s23, 6   ;;  %s1036_s18 = smov %s965_s5 }
 0x178   : > { %s1037_s19 = smov %s865_s21  ;;  %s1038_s20 = smov %s869_s22 }
 0x179   : > { %s1039_s21 = smov %s1042_s3  ;;  %s1040_s22 = smov %s1046_s24 }
 0x17a   :  { %14 = sbr.rel (!%p12_p11) target bundleno = 6 (0x6), region = 112 }

</bundles_post_ra>
